<compile_context>
chip_gen: v6e
topology: v6e:2x2x1
jax: 0.10.0
libtpu: 0.0.40
codegen_flags: <defaults>
</compile_context>

<pallas_src>
import functools

import jax
import jax.numpy as jnp
from jax.experimental import pallas as pl
from jax.experimental.pallas import tpu as pltpu


def _round_up(x, m):
    return (x + m - 1) // m * m


def _pick_block_rows(rows_pad, target_rows):
    """Largest multiple of 8 that divides rows_pad and is <= target_rows."""
    units = rows_pad // 8
    tgt = max(1, min(units, max(1, target_rows // 8)))
    for d in range(tgt, 0, -1):
        if units % d == 0:
            return d * 8
    return 8


# ----------------------------------------------------------------------------
# Kernel
# ----------------------------------------------------------------------------
def _memory_unit_kernel(x_ref, wt_ref, w_ref, bias_ref, out_ref, att_ref, *,
                        shrink_thres):
    """Fused MemoryUnit forward for one tile of rows.

    x_ref   : (Br, Fp)  bf16  input features (zero-padded on Fp)
    wt_ref  : (Fp, Mp)  bf16  weight^T (zero-padded), single-buffered
    w_ref   : (Mp, Fp)  bf16  weight   (zero-padded), single-buffered
    bias_ref: (1,  Mp)  f32   0 for valid memory slots, -1e30 for pad slots
    out_ref : (Br, Fp)        att @ W
    att_ref : (Br, Mp)        attention weights
    """
    x = x_ref[...]

    # Attention logits on the MXU, f32 accumulation: (Br, Mp).
    logits = jnp.dot(x, wt_ref[...], preferred_element_type=jnp.float32)
    # Additive pad mask (precomputed on host; 1 vadd/elem instead of iota+where).
    logits = logits + bias_ref[...]

    # Row-local softmax over the memory dimension.
    m = jnp.max(logits, axis=1, keepdims=True)
    e = jnp.exp(logits - m)
    denom = jnp.sum(e, axis=1, keepdims=True)
    att = e * (1.0 / denom)                      # exact per-row reciprocal

    if shrink_thres > 0.0:
        # hard_shrink_relu: relu(a - lambd) * a / (|a - lambd| + eps)
        # == a * relu(t) / (relu(t) + eps)  since the output is 0 when t <= 0.
        t = jnp.maximum(att - shrink_thres, 0.0)
        att = att * t * pl.reciprocal(t + 1e-12, approx=True)
        # F.normalize(p=1, dim=1): att >= 0, so the L1 norm is a plain sum.
        l1 = jnp.sum(att, axis=1, keepdims=True)
        att = att * (1.0 / jnp.maximum(l1, 1e-12))   # exact per-row reciprocal

    att_ref[...] = att.astype(att_ref.dtype)
    # Read-back matmul on the MXU: (Br, Mp) @ (Mp, Fp), f32 accumulation.
    out_ref[...] = jnp.dot(att.astype(w_ref.dtype), w_ref[...],
                           preferred_element_type=jnp.float32
                           ).astype(out_ref.dtype)


# ----------------------------------------------------------------------------
# Wrapper
# ----------------------------------------------------------------------------
def memory_unit(x, weight, *, shrink_thres=0.0025,
                compute_dtype=jnp.bfloat16, att_dtype=jnp.float32,
                max_block_rows=1024):
    """MemoryUnit.forward.

    x: (T, fea_dim), weight: (mem_dim, fea_dim).
    Returns (output, att): output (T, fea_dim) f32, att (T, mem_dim) att_dtype.
    """
    t_rows, fea_dim = x.shape
    mem_dim, fea_dim_w = weight.shape
    assert fea_dim == fea_dim_w

    in_isz = jnp.dtype(compute_dtype).itemsize
    att_isz = jnp.dtype(att_dtype).itemsize

    # Lane/sublane-aligned padded shapes.
    fea_pad = _round_up(fea_dim, 128)
    mem_pad = _round_up(mem_dim, 128)
    rows_pad = _round_up(t_rows, 8)

    # ---- VMEM budget (derived per generation from actual sizes) ------------
    try:
        vmem_cap = int(pltpu.get_tpu_info().vmem_capacity_bytes)
    except Exception:
        vmem_cap = 64 * 1024 * 1024          # conservative (v7x physical)
    budget = int(vmem_cap * 0.75)

    weight_bytes = 2 * fea_pad * mem_pad * in_isz          # W and W^T, Buffered(1)
    bias_bytes = mem_pad * 4
    per_row_bytes = (2 * fea_pad * in_isz                   # x tile, double-buffered
                     + 2 * fea_pad * 4                      # out tile, double-buffered
                     + 2 * mem_pad * att_isz                # att tile, double-buffered
                     + 6 * mem_pad * 4                      # f32 softmax/shrink temps
                     + 2 * fea_pad * 4)
    avail = budget - weight_bytes - bias_bytes
    if avail <= per_row_bytes * 8:
        # TODO(synk): add a mem_dim-tiled online-softmax path for weights that
        # do not fit VMEM (needed when 2*fea_pad*mem_pad*2B exceeds ~budget).
        vmem_rows = 8
    else:
        vmem_rows = max(8, (avail // per_row_bytes) // 8 * 8)

    # ---- Row tiling: >=2 grid steps (megacore), divide rows_pad exactly ----
    two_step_rows = _round_up(pl.cdiv(rows_pad, 2), 8) if rows_pad >= 16 else rows_pad
    target_rows = max(8, min(max_block_rows, vmem_rows, two_step_rows, rows_pad))
    block_rows = _pick_block_rows(rows_pad, target_rows)
    if block_rows * 4 < target_rows:
        # No decent divisor: pad rows up to a full tile instead of tiny tiles.
        block_rows = target_rows
        rows_pad = _round_up(rows_pad, block_rows)
    grid = (rows_pad // block_rows,)

    tile_bytes = weight_bytes + bias_bytes + block_rows * per_row_bytes
    vmem_limit = min(max(tile_bytes + (4 << 20), 32 << 20), int(vmem_cap * 0.85))

    # ---- Host-side operand prep (pad only when needed) ----------------------
    if rows_pad != t_rows or fea_pad != fea_dim:
        x_p = jnp.pad(x.astype(compute_dtype),
                      ((0, rows_pad - t_rows), (0, fea_pad - fea_dim)))
    else:
        x_p = x.astype(compute_dtype)
    w_p = jnp.pad(weight.astype(compute_dtype),
                  ((0, mem_pad - mem_dim), (0, fea_pad - fea_dim)))
    wt_p = jnp.transpose(w_p)                 # pre-transpose once on the host
    bias = jnp.where(jnp.arange(mem_pad) < mem_dim, 0.0, -1e30
                     ).astype(jnp.float32).reshape(1, mem_pad)

    kernel = functools.partial(_memory_unit_kernel,
                               shrink_thres=float(shrink_thres))

    cost = pl.CostEstimate(
        flops=4 * rows_pad * fea_pad * mem_pad,
        transcendentals=rows_pad * mem_pad,
        bytes_accessed=(rows_pad * fea_pad * in_isz
                        + 2 * mem_pad * fea_pad * in_isz
                        + mem_pad * 4
                        + rows_pad * fea_pad * 4
                        + rows_pad * mem_pad * att_isz),
    )

    out_p, att_p = pl.pallas_call(
        kernel,
        out_shape=(
            jax.ShapeDtypeStruct((rows_pad, fea_pad), jnp.float32),
            jax.ShapeDtypeStruct((rows_pad, mem_pad), att_dtype),
        ),
        grid_spec=pltpu.PrefetchScalarGridSpec(
            num_scalar_prefetch=0,
            grid=grid,
            in_specs=[
                pl.BlockSpec((block_rows, fea_pad), lambda i: (i, 0)),
                pl.BlockSpec((fea_pad, mem_pad), lambda i: (0, 0),
                             pipeline_mode=pl.Buffered(1)),
                pl.BlockSpec((mem_pad, fea_pad), lambda i: (0, 0),
                             pipeline_mode=pl.Buffered(1)),
                pl.BlockSpec((1, mem_pad), lambda i: (0, 0),
                             pipeline_mode=pl.Buffered(1)),
            ],
            out_specs=(
                pl.BlockSpec((block_rows, fea_pad), lambda i: (i, 0)),
                pl.BlockSpec((block_rows, mem_pad), lambda i: (i, 0)),
            ),
        ),
        compiler_params=pltpu.CompilerParams(
            dimension_semantics=("parallel",),
            vmem_limit_bytes=int(vmem_limit),
        ),
        cost_estimate=cost,
    )(x_p, wt_p, w_p, bias)

    return out_p[:t_rows, :fea_dim], att_p[:t_rows, :mem_dim]


# ----------------------------------------------------------------------------
# Pure-JAX reference (for the self-check only)
# ----------------------------------------------------------------------------
def _memory_unit_ref(x, weight, shrink_thres):
    logits = x @ weight.T
    logits = logits - logits.max(axis=1, keepdims=True)
    e = jnp.exp(logits)
    att = e / e.sum(axis=1, keepdims=True)
    if shrink_thres > 0:
        t = att - shrink_thres
        att = jnp.maximum(t, 0.0) * att / (jnp.abs(t) + 1e-12)
        att = att / jnp.maximum(jnp.sum(jnp.abs(att), axis=1, keepdims=True),
                                1e-12)
    return att @ weight, att


# ----------------------------------------------------------------------------
if __name__ == "__main__":
    key = jax.random.PRNGKey(0)
    xkey, wkey = jax.random.split(key)

    # Small, intentionally non-aligned shapes (padding + multi-step grid paths).
    rows, fea_dim, mem_dim = 48, 50, 200
    shrink_thres = 0.0025

    x = jax.random.normal(xkey, (rows, fea_dim), jnp.float32)
    stdv = 1.0 / fea_dim ** 0.5           # matches reset_parameters()
    weight = jax.random.uniform(wkey, (mem_dim, fea_dim), jnp.float32,
                                -stdv, stdv)

    fwd = jax.jit(functools.partial(memory_unit, shrink_thres=shrink_thres))
    out, att = fwd(x, weight)
    jax.block_until_ready((out, att))

    assert out.shape == (rows, fea_dim)
    assert att.shape == (rows, mem_dim)
    assert bool(jnp.all(jnp.isfinite(out))) and bool(jnp.all(jnp.isfinite(att)))
    # After hard-shrink + L1 renorm every row sums to 1 (exact reciprocals now).
    assert bool(jnp.allclose(jnp.sum(att, axis=1), 1.0, atol=1e-3))

    # Self-check vs a pure-JAX reference evaluated on the same bf16-rounded
    # operands.  Tolerances are loose because hard_shrink_relu is discontinuous
    # at the threshold, so bf16/approx-reciprocal perturbations can flip a few
    # elements across it (bounded by ~shrink_thres per element).
    x_r = x.astype(jnp.bfloat16).astype(jnp.float32)
    w_r = weight.astype(jnp.bfloat16).astype(jnp.float32)
    out_ref, att_ref = _memory_unit_ref(x_r, w_r, shrink_thres)
    assert bool(jnp.allclose(att, att_ref, rtol=2e-2, atol=6e-3)), "att mismatch"
    assert bool(jnp.allclose(out, out_ref, rtol=2e-2, atol=4e-3)), "out mismatch"

    print("KERNEL_OK")
</pallas_src>

<mosaic_0001>
module attributes {stable_mosaic.version = 11 : i64} {
  func.func @_memory_unit_kernel(%arg0: i32, %arg1: memref<24x128xbf16, #tpu.memory_space<vmem>>, %arg2: memref<128x256xbf16, #tpu.memory_space<vmem>>, %arg3: memref<256x128xbf16, #tpu.memory_space<vmem>>, %arg4: memref<1x256xf32, #tpu.memory_space<vmem>>, %arg5: memref<24x128xf32, #tpu.memory_space<vmem>>, %arg6: memref<24x256xf32, #tpu.memory_space<vmem>>) attributes {dimension_semantics = [#tpu.dimension_semantics<parallel>], iteration_bounds = array<i64: 2>, scalar_prefetch = 0 : i64, scratch_operands = 0 : i64, tpu.core_type = #tpu.core_type<tc>, window_params = [{transform_indices = @transform_0, window_bounds = array<i64: 24, 128>}, {pipeline_mode = #tpu.pipeline_mode<synchronous>, transform_indices = @transform_1, window_bounds = array<i64: 128, 256>}, {pipeline_mode = #tpu.pipeline_mode<synchronous>, transform_indices = @transform_2, window_bounds = array<i64: 256, 128>}, {pipeline_mode = #tpu.pipeline_mode<synchronous>, transform_indices = @transform_3, window_bounds = array<i64: 1, 256>}, {transform_indices = @transform_4, window_bounds = array<i64: 24, 128>}, {transform_indices = @transform_5, window_bounds = array<i64: 24, 256>}]} {
    %c0 = arith.constant 0 : index
    %c0_0 = arith.constant 0 : index
    %0 = vector.load %arg1[%c0, %c0_0] : memref<24x128xbf16, #tpu.memory_space<vmem>>, vector<24x128xbf16>
    %c0_1 = arith.constant 0 : index
    %c0_2 = arith.constant 0 : index
    %1 = vector.load %arg2[%c0_1, %c0_2] : memref<128x256xbf16, #tpu.memory_space<vmem>>, vector<128x256xbf16>
    %cst = arith.constant dense<0.000000e+00> : vector<24x256xf32>
    %2 = tpu.matmul %0, %1, %cst {dimension_numbers = #tpu.dot_dimension_numbers<[1], [0], [0], [1], [0, 0, 1, 1], [], []>} : vector<24x128xbf16>, vector<128x256xbf16>, vector<24x256xf32> -> vector<24x256xf32>
    %c0_3 = arith.constant 0 : index
    %c0_4 = arith.constant 0 : index
    %3 = vector.load %arg4[%c0_3, %c0_4] : memref<1x256xf32, #tpu.memory_space<vmem>>, vector<1x256xf32>
    %4 = vector.broadcast %3 : vector<1x256xf32> to vector<24x256xf32>
    %5 = arith.addf %2, %4 : vector<24x256xf32>
    %cst_5 = arith.constant dense<0xFF800000> : vector<24xf32>
    %6 = vector.multi_reduction <maximumf>, %5, %cst_5 [1] : vector<24x256xf32> to vector<24xf32>
    %7 = vector.shape_cast %6 : vector<24xf32> to vector<24x1xf32>
    %8 = vector.broadcast %7 : vector<24x1xf32> to vector<24x256xf32>
    %9 = arith.subf %5, %8 : vector<24x256xf32>
    %10 = math.exp %9 : vector<24x256xf32>
    %cst_6 = arith.constant dense<0.000000e+00> : vector<24xf32>
    %11 = vector.multi_reduction <add>, %10, %cst_6 [1] : vector<24x256xf32> to vector<24xf32>
    %12 = vector.shape_cast %11 : vector<24xf32> to vector<24x1xf32>
    %cst_7 = arith.constant 1.000000e+00 : f32
    %13 = vector.broadcast %cst_7 : f32 to vector<24x1xf32>
    %14 = arith.divf %13, %12 : vector<24x1xf32>
    %15 = vector.broadcast %14 : vector<24x1xf32> to vector<24x256xf32>
    %16 = arith.mulf %10, %15 : vector<24x256xf32>
    %cst_8 = arith.constant 2.500000e-03 : f32
    %17 = vector.broadcast %cst_8 : f32 to vector<24x256xf32>
    %18 = arith.subf %16, %17 : vector<24x256xf32>
    %cst_9 = arith.constant 0.000000e+00 : f32
    %19 = vector.broadcast %cst_9 : f32 to vector<24x256xf32>
    %20 = arith.maximumf %18, %19 : vector<24x256xf32>
    %21 = arith.mulf %16, %20 : vector<24x256xf32>
    %cst_10 = arith.constant 9.99999996E-13 : f32
    %22 = vector.broadcast %cst_10 : f32 to vector<24x256xf32>
    %23 = arith.addf %20, %22 : vector<24x256xf32>
    %24 = tpu.reciprocal %23 {approx = true} : vector<24x256xf32> -> vector<24x256xf32>
    %25 = arith.mulf %21, %24 : vector<24x256xf32>
    %cst_11 = arith.constant dense<0.000000e+00> : vector<24xf32>
    %26 = vector.multi_reduction <add>, %25, %cst_11 [1] : vector<24x256xf32> to vector<24xf32>
    %27 = vector.shape_cast %26 : vector<24xf32> to vector<24x1xf32>
    %cst_12 = arith.constant 9.99999996E-13 : f32
    %28 = vector.broadcast %cst_12 : f32 to vector<24x1xf32>
    %29 = arith.maximumf %27, %28 : vector<24x1xf32>
    %cst_13 = arith.constant 1.000000e+00 : f32
    %30 = vector.broadcast %cst_13 : f32 to vector<24x1xf32>
    %31 = arith.divf %30, %29 : vector<24x1xf32>
    %32 = vector.broadcast %31 : vector<24x1xf32> to vector<24x256xf32>
    %33 = arith.mulf %25, %32 : vector<24x256xf32>
    %c0_14 = arith.constant 0 : index
    %c0_15 = arith.constant 0 : index
    %34 = vector.load %arg6[%c0_14, %c0_15] : memref<24x256xf32, #tpu.memory_space<vmem>>, vector<24x256xf32>
    tpu.vector_store %arg6[%c0_14, %c0_15], %33 {strides = array<i32>} : memref<24x256xf32, #tpu.memory_space<vmem>>, vector<24x256xf32>,
    %35 = arith.truncf %33 : vector<24x256xf32> to vector<24x256xbf16>
    %c0_16 = arith.constant 0 : index
    %c0_17 = arith.constant 0 : index
    %36 = vector.load %arg3[%c0_16, %c0_17] : memref<256x128xbf16, #tpu.memory_space<vmem>>, vector<256x128xbf16>
    %cst_18 = arith.constant dense<0.000000e+00> : vector<24x128xf32>
    %37 = tpu.matmul %35, %36, %cst_18 {dimension_numbers = #tpu.dot_dimension_numbers<[1], [0], [0], [1], [0, 0, 1, 1], [], []>} : vector<24x256xbf16>, vector<256x128xbf16>, vector<24x128xf32> -> vector<24x128xf32>
    %c0_19 = arith.constant 0 : index
    %c0_20 = arith.constant 0 : index
    %38 = vector.load %arg5[%c0_19, %c0_20] : memref<24x128xf32, #tpu.memory_space<vmem>>, vector<24x128xf32>
    tpu.vector_store %arg5[%c0_19, %c0_20], %37 {strides = array<i32>} : memref<24x128xf32, #tpu.memory_space<vmem>>, vector<24x128xf32>,
    return
  }
  func.func @transform_0(%arg0: i32) -> (i32, i32) {
    %c0_i32 = arith.constant 0 : i32
    %c0_i32_0 = arith.constant 0 : i32
    return %arg0, %c0_i32 : i32, i32
  }
  func.func @transform_1(%arg0: i32) -> (i32, i32) {
    %c0_i32 = arith.constant 0 : i32
    %c0_i32_0 = arith.constant 0 : i32
    %c0_i32_1 = arith.constant 0 : i32
    return %c0_i32, %c0_i32_0 : i32, i32
  }
  func.func @transform_2(%arg0: i32) -> (i32, i32) {
    %c0_i32 = arith.constant 0 : i32
    %c0_i32_0 = arith.constant 0 : i32
    %c0_i32_1 = arith.constant 0 : i32
    return %c0_i32, %c0_i32_0 : i32, i32
  }
  func.func @transform_3(%arg0: i32) -> (i32, i32) {
    %c0_i32 = arith.constant 0 : i32
    %c0_i32_0 = arith.constant 0 : i32
    %c0_i32_1 = arith.constant 0 : i32
    return %c0_i32, %c0_i32_0 : i32, i32
  }
  func.func @transform_4(%arg0: i32) -> (i32, i32) {
    %c0_i32 = arith.constant 0 : i32
    %c0_i32_0 = arith.constant 0 : i32
    return %arg0, %c0_i32 : i32, i32
  }
  func.func @transform_5(%arg0: i32) -> (i32, i32) {
    %c0_i32 = arith.constant 0 : i32
    %c0_i32_0 = arith.constant 0 : i32
    return %arg0, %c0_i32 : i32, i32
  }
}

</mosaic_0001>

<bundles_post_ra>
// kernel: memory_unit.1
= control target key start
LH: loop header
LB: loop body
LE: loop exit
PB: predicated region body
PF: predicated region fallthrough
CT: control target
= control target key end

     0   :  { %11 = vsyncpa [#allocation3], 0  ;;  %s1413_s0 = inlined_call_operand.vmem [shape: bf16[48,128], index: 0, kind: input, shape index: {}]   ;;  %s1414_s1 = inlined_call_operand.vmem [shape: bf16[128,256], index: 1, kind: input, shape index: {}]   ;;  %s1415_s2 = inlined_call_operand.vmem [shape: bf16[256,128], index: 2, kind: input, shape index: {}]   ;;  %s1416_s3 = inlined_call_operand.vmem [shape: f32[1,256], index: 3, kind: input, shape index: {}]   ;;  %s1417_s4 = inlined_call_operand.hbm [shape: f32[48,128], index: 4, kind: output, shape index: {0}]   ;;  %s1418_s5 = inlined_call_operand.hbm [shape: f32[48,256], index: 5, kind: output, shape index: {1}]  }
   0x1   :  { %13 = vsyncpa [#allocation3 + $0x1], 0 }
   0x2   :  { %14 = vsyncpa [#allocation5], 0 }
   0x3   :  { %16 = vsyncpa [#allocation5 + $0x1], 0  ;;  %s1178_s18 = smov 0   ;;  %s1180_s19 = smov 0  }
   0x4   :  { %s1182_s20 = smov 0   ;;  %s1184_s21 = smov 0  }
   0x5 LB: > { %s1199_s22 = sadd.s32 4294967295, %s1139_s21   ;;  %s838_s23 = sadd.s32 4294967294, %s1139_s21   ;;  %s1139_s21 = sphi %s1184_s21, %s1424_s21   ;;  %s1135_s20 = sphi %s1182_s20, %s1423_s20   ;;  %s1131_s19 = sphi %s1180_s19, %s1422_s19   ;;  %s1127_s18 = sphi %s1178_s18, %s1421_s18  }
   0x6   : > { %s1203_s24 = sadd.s32 1, %s1139_s21   ;;  %s118_s25 = sadd.s32 1, %s1135_s20 }
   0x7   : > { %s115_s26 = ssub.s32 %s1139_s21, %s1203_s24  ;;  %p128_p0 = scmp.ne.s32.totalorder %s1135_s20, %s1131_s19 }
   0x8   : > { %p116_p1 = scmp.eq.s32.totalorder %s115_s26, 0  ;;  %p129_p2 = scmp.eq.s32.totalorder %s1199_s22, 1 }
   0x9   : > { %p134_p3 = scmp.ne.s32.totalorder %s1131_s19, %s1127_s18  ;;  %p135_p4 = scmp.eq.s32.totalorder %s838_s23, 1 }
   0xa   : > { %s1214_s27 = scalar_select %p116_p1, %s1135_s20, %s118_s25  }
   0xb   : > { %p1216_p5 = por %p129_p2, %p128_p0  ;;  %p1220_p6 = por %p135_p4, %p134_p3 }
   0xc   : > { %p841_p7 = scmp.ge.s32.totalorder %s1139_s21, 1  ;;  %p197_p8 = scmp.lt.s32.totalorder %s1139_s21, 3 }
   0xe   : > { %p198_p9 = pnand %p841_p7, %p197_p8 }
   0xf   : > { %s230_s7 = smul.u32 (!%p198_p9), 3, %s1199_s22  ;;  %s1142_s6 = smov (!%p198_p9), [#allocation4]  }
  0x10   : > { %201 = sbr.rel (%p198_p9) target bundleno = 974 (0x3ce), region = 36  ;;  %s1053_s9 = sshll.u32 (!%p198_p9), %s1142_s6, 4  ;;  %s1054_s9 = int_to_ptr.vmem [resolvable:$false] %s1053_s9 }
  0x11   : > { %p231_p10 = scmp.lt.s32.totalorder (!%p198_p9), %s230_s7, 5  ;;  %s1055_s10 = scalar_lea.vmem (!%p198_p9), %s1054_s9, 1536 }
  0x15   : > { %v971_v0 = vld [vmem:[%s1414_s1 + $0x74] ss:$8 sps:$4 sm:$0xff]   ;;  %v973_v1 = vld [vmem:[%s1414_s1 + $0x70] ss:$8 sps:$4 sm:$0xff]   ;;  %v1141_v2 = vmov 0   ;;  %s1426_s7 = smov (!%p231_p10, %s230_s7), 5  ;;  %v260_v19 = vlaneseq }
  0x16   : > { %392 = vmatprep.mubr.bf16.mxu0 %v1141_v2  ;;  %360 = vmatprep.subr.bf16.mxu0 %v971_v0  ;;  %v974_v3 = vld [vmem:[%s1414_s1 + $0x64] ss:$8 sps:$4 sm:$0xff]   ;;  %v976_v4 = vld [vmem:[%s1414_s1 + $0x60] ss:$8 sps:$4 sm:$0xff]   ;;  %v977_v5 = vld [vmem:[%s1414_s1 + $0x54] ss:$8 sps:$4 sm:$0xff]  }
  0x17   : > { %361 = vmatpush1.bf16.msra.mxu0 %v973_v1  ;;  %s842_s16 = sshll.u32 %s1426_s7, 2  ;;  %v979_v6 = vld [vmem:[%s1414_s1 + $0x50] ss:$8 sps:$4 sm:$0xff]   ;;  %v980_v7 = vld [vmem:[%s1414_s1 + $0x44] ss:$8 sps:$4 sm:$0xff]   ;;  %v261_v20 = vshrl.u32 %v260_v19, 7 }
  0x18   : > { %362 = vmatprep.subr.bf16.mxu0 %v974_v3  ;;  %s234_s8 = scalar_lea.vmem %s1413_s0, %s842_s16  ;;  %v982_v8 = vld [vmem:[%s1414_s1 + $0x40] ss:$8 sps:$4 sm:$0xff]   ;;  %v983_v9 = vld [vmem:[%s1414_s1 + $0x34] ss:$8 sps:$4 sm:$0xff]   ;;  %v985_v10 = vld [vmem:[%s1414_s1 + $0x30] ss:$8 sps:$4 sm:$0xff]  }
  0x19   : > { %v986_v11 = vld [vmem:[%s1414_s1 + $0x24] ss:$8 sps:$4 sm:$0xff]   ;;  %v988_v12 = vld [vmem:[%s1414_s1 + $0x20] ss:$8 sps:$4 sm:$0xff]   ;;  %v989_v13 = vld [vmem:[%s1414_s1 + $0x14] ss:$8 sps:$4 sm:$0xff]  }
  0x1a   : > { %v991_v14 = vld [vmem:[%s1414_s1 + $0x10] ss:$8 sps:$4 sm:$0xff]   ;;  %v992_v15 = vld [vmem:[%s1414_s1 + $0x4] ss:$8 sps:$4 sm:$0xff]   ;;  %v994_v16 = vld [vmem:[%s1414_s1] ss:$8 sps:$4 sm:$0xff]  }
  0x1b   : > { %363 = vmatpush1.bf16.msra.mxu0 %v976_v4  ;;  %v995_v17 = vld [vmem:[%s234_s8] sm:$0xff]   ;;  %v996_v18 = vld [vmem:[%s234_s8 + $0x8] ss:$0 sps:$4 sm:$0xff]   ;;  %v262_v21 = vsub.s32 0, %v261_v20  ;;  %v266_v22 = vsub.s32 1, %v261_v20  ;;  %v997_v3 = vld [vmem:[%s1415_s2 + $0x78] sm:$0xff]  }
  0x1c   : > { %364 = vmatprep.subr.bf16.mxu0 %v977_v5  ;;  %v258_v23 = vld [vmem:[%s1416_s3] sm:$0x3]  ;;  %v998_v4 = vld [vmem:[%s1415_s2 + $0x38] sm:$0xff]   ;;  %v999_v5 = vld [vmem:[%s1415_s2 + $0x70] sm:$0xff]   ;;  %892 = vmatprep.subr.bf16.mxu1 %v997_v3  ;;  %s1330_s8 = sand.u32 1, %s1131_s19   ;;  %s891_s16 = smul.u32 768, %s1199_s22 }
  0x1d   : > { %v263_v24 = vrot.slane %v258_v23, %v262_v21  ;;  %v267_v25 = vrot.slane %v258_v23, %v266_v22  ;;  %893 = vmatpush3.bf16.msra.mxu1 %v998_v4  ;;  %v1010_v3 = vld [vmem:[%s1415_s2 + $0x8] sm:$0xff]   ;;  %v1011_v4 = vld [vmem:[%s1415_s2 + $0x40] sm:$0xff]   ;;  %s921_s13 = smul.u32 48, %s1330_s8  ;;  %s714_s26 = scalar_lea.sflag [#allocation5], %s1330_s8 }
  0x1e   : > { %894 = vmatprep.subr.bf16.mxu1 %v999_v5  ;;  %v1012_v5 = vld [vmem:[%s1415_s2] sm:$0xff]   ;;  %s1339_s25 = scalar_lea.hbm %s1418_s5, %s891_s16 }
  0x1f   : > { %365 = vmatpush1.bf16.msra.mxu0 %v979_v6  ;;  %v1000_v6 = vld [vmem:[%s1415_s2 + $0x30] sm:$0xff]   ;;  %s229_s14 = scalar_lea.vmem [#allocation4], %s921_s13 }
  0x20   : > { %366 = vmatprep.subr.bf16.mxu0 %v980_v7  ;;  %s744_s15 = sshll.u32 %s229_s14, 4  ;;  %s1334_s15 = int_to_ptr.vmem [resolvable:$true] %s744_s15 }
  0x21   : > { %895 = vmatpush3.bf16.msra.mxu1 %v1000_v6  ;;  %s1049_s30 = scalar_lea.vmem %s1334_s15, 768  ;;  %p1056_p0 = scmp.lt.s32.totalorder %s1334_s15, %s1054_s9 }
  0x22   : > { %p1050_p11 = scmp.ne.s32.totalorder %s1334_s15, %s1049_s30  ;;  %p1057_p1 = scmp.lt.s32.totalorder %s1055_s10, %s1049_s30 }
  0x23   : > { %367 = vmatpush1.bf16.msra.mxu0 %v982_v8 }
  0x24   : > { %368 = vmatprep.subr.bf16.mxu0 %v983_v9  ;;  %p1051_p12 = pnand %p1050_p11, %p1216_p5  ;;  %p1058_p2 = por %p1057_p1, %p1056_p0 }
  0x26   : > { %p1052_p13 = pneg %p1051_p12 }
  0x27   : > { %369 = vmatpush1.bf16.msra.mxu0 %v985_v10 }
  0x28   : > { %370 = vmatprep.subr.bf16.mxu0 %v986_v11  ;;  %p1059_p3 = pnand %p1058_p2, %p1052_p13 }
  0x2b   : > { %371 = vmatpush1.bf16.msra.mxu0 %v988_v12 }
  0x2c   : > { %372 = vmatprep.subr.bf16.mxu0 %v989_v13 }
  0x2f   : > { %373 = vmatpush1.bf16.msra.mxu0 %v991_v14 }
  0x30   : > { %374 = vmatprep.subr.bf16.mxu0 %v992_v15 }
  0x33   : > { %375 = vmatpush1.bf16.msra.mxu0 %v994_v16 }
  0x36   : > { %393 = vmatmul.mubr.bf16.vlgmr.msra.gmra.mxu0 %v995_v17 }
  0x37   : > { %402 = vmatprep.mubr.bf16.mxu0 %v1141_v2 }
  0x3e   : > { %403 = vmatmul.mubr.bf16.gmra.mxu0 %v996_v18 }
  0xf6   : > { %v394_v26 = vpop.f32.mrf.mxu0 }
  0xf7   : > { %v395_v28 = vadd.f32 %v394_v26, %v263_v24 }
  0xf8   : > { %v396_v27 = vpop.f32.mrf.mxu0 }
  0xf9   : > { %v397_v29 = vadd.f32 %v396_v27, %v267_v25 }
  0xfa   : > { %v398_v30 = vpop.f32.mrf.mxu0 }
  0xfb   : > { %v411_v31 = vmax.f32 %v395_v28, %v397_v29  ;;  %v399_v33 = vadd.f32 %v398_v30, %v263_v24 }
  0xfc   : > { %v400_v32 = vpop.f32.mrf.mxu0 }
  0xfd   : > { %v401_v34 = vadd.f32 %v400_v32, %v267_v25  ;;  %412 = vmax.xlane.f32.xlu0 %v411_v31 }
  0xfe   : > { %v404_v35 = vpop.f32.mrf.mxu0 }
  0xff   : > { %v405_v36 = vadd.f32 %v404_v35, %v263_v24  ;;  %v414_v37 = vmax.f32 %v399_v33, %v401_v34 }
 0x100   : > { %v406_v38 = vpop.f32.mrf.mxu0 }
 0x101   : > { %v407_v39 = vadd.f32 %v406_v38, %v267_v25  ;;  %415 = vmax.xlane.f32.xlu0 %v414_v37 }
 0x102   : > { %v408_v40 = vpop.f32.mrf.mxu0 }
 0x103   : > { %v417_v41 = vmax.f32 %v405_v36, %v407_v39 }
 0x104   : > { %v409_v42 = vpop.f32.mrf.mxu0 }
 0x105   : > { %418 = vmax.xlane.f32.xlu1 %v417_v41 }
 0x186   : > { %v413_v43 = vpop.xlane.xlu0 %412 }
 0x187   : > { %v420_v44 = vsub.f32 %v395_v28, %v413_v43  ;;  %v421_v45 = vsub.f32 %v397_v29, %v413_v43 }
 0x189   : > { %v426_v46 = vmul.f32 1.442695, %v420_v44  ;;  %v428_v47 = vmul.f32 1.442695, %v421_v45 }
 0x18a   : > { %v416_v48 = vpop.xlane.xlu0 %415 }
 0x18b   : > { %1013 = vpow2.f32 %v426_v46  ;;  %v422_v49 = vsub.f32 %v399_v33, %v416_v48  ;;  %v423_v50 = vsub.f32 %v401_v34, %v416_v48 }
 0x18c   : > { %1015 = vpow2.f32 %v428_v47 }
 0x18d   : > { %v430_v51 = vmul.f32 1.442695, %v422_v49  ;;  %v432_v52 = vmul.f32 1.442695, %v423_v50 }
 0x18e   : > { %v419_v53 = vpop.xlane.xlu1 %418 }
 0x18f   : > { %1017 = vpow2.f32 %v430_v51  ;;  %v424_v54 = vsub.f32 %v405_v36, %v419_v53  ;;  %v425_v55 = vsub.f32 %v407_v39, %v419_v53 }
 0x190   : > { %1019 = vpow2.f32 %v432_v52 }
 0x191   : > { %v434_v56 = vmul.f32 1.442695, %v424_v54  ;;  %v436_v57 = vmul.f32 1.442695, %v425_v55 }
 0x193   : > { %1021 = vpow2.f32 %v434_v56 }
 0x194   : > { %1023 = vpow2.f32 %v436_v57 }
 0x198   : > { %v1014_v58 = vpop.eup %1013 }
 0x199   : > { %v1016_v59 = vpop.eup %1015 }
 0x19a   : > { %v438_v60 = vadd.f32 %v1016_v59, %v1014_v58 }
 0x19c   : > { %v1018_v61 = vpop.eup %1017  ;;  %439 = vadd.xlane.f32.xlu1 %v438_v60  ;;  %v1003_v60 = vld [vmem:[%s1415_s2 + $0x60] sm:$0xff]  }
 0x19d   : > { %v1020_v62 = vpop.eup %1019 }
 0x19e   : > { %v441_v63 = vadd.f32 %v1020_v62, %v1018_v61 }
 0x1a0   : > { %v1022_v0 = vpop.eup %1021  ;;  %442 = vadd.xlane.f32.xlu0 %v441_v63  ;;  %v1006_v63 = vld [vmem:[%s1415_s2 + $0x18] sm:$0xff]  }
 0x1a1   : > { %v1024_v1 = vpop.eup %1023 }
 0x1a2   : > { %v444_v2 = vadd.f32 %v1024_v1, %v1022_v0 }
 0x1a4   : > { %445 = vadd.xlane.f32.xlu1 %v444_v2  ;;  %v1009_v2 = vld [vmem:[%s1415_s2 + $0x48] sm:$0xff]  }
 0x225   : > { %v440_v7 = vpop.xlane.xlu1 %439 }
 0x226   : > { %1025 = vrcp.f32 %v440_v7 }
 0x229   : > { %v443_v8 = vpop.xlane.xlu0 %442 }
 0x22a   : > { %1027 = vrcp.f32 %v443_v8 }
 0x22d   : > { %v446_v9 = vpop.xlane.xlu1 %445 }
 0x22e   : > { %1029 = vrcp.f32 %v446_v9 }
 0x233   : > { %v1026_v10 = vpop.eup %1025 }
 0x234   : > { %v453_v11 = vmul.f32 %v1026_v10, %v1014_v58  ;;  %v454_v12 = vmul.f32 %v1026_v10, %v1016_v59  ;;  %v1001_v58 = vld [vmem:[%s1415_s2 + $0x68] sm:$0xff]  }
 0x235   : > { %v1002_v59 = vld [vmem:[%s1415_s2 + $0x28] sm:$0xff]   ;;  %896 = vmatprep.subr.bf16.mxu1 %v1001_v58 }
 0x236   : > { %v861_v13 = vadd.f32 -0.0025, %v453_v11  ;;  %v862_v14 = vadd.f32 -0.0025, %v454_v12  ;;  %897 = vmatpush3.bf16.msra.mxu1 %v1002_v59 }
 0x237   : > { %v1028_v15 = vpop.eup %1027  ;;  %898 = vmatprep.subr.bf16.mxu1 %v1003_v60 }
 0x238   : > { %v465_v16 = vmax.f32 %v861_v13, 0.0  ;;  %v466_v17 = vmax.f32 %v862_v14, 0.0  ;;  %v455_v18 = vmul.f32 %v1028_v15, %v1018_v61  ;;  %v456_v19 = vmul.f32 %v1028_v15, %v1020_v62  ;;  %v1004_v61 = vld [vmem:[%s1415_s2 + $0x20] sm:$0xff]   ;;  %v1005_v62 = vld [vmem:[%s1415_s2 + $0x58] sm:$0xff]  }
 0x23a   : > { %v477_v20 = vadd.f32 1e-12, %v465_v16  ;;  %v478_v21 = vadd.f32 1e-12, %v466_v17  ;;  %v863_v23 = vadd.f32 -0.0025, %v455_v18  ;;  %v471_v37 = vmul.f32 %v465_v16, %v453_v11  ;;  %899 = vmatpush3.bf16.msra.mxu1 %v1004_v61 }
 0x23b   : > { %v1030_v22 = vpop.eup %1029  ;;  %v864_v24 = vadd.f32 -0.0025, %v456_v19  ;;  %v472_v39 = vmul.f32 %v466_v17, %v454_v12  ;;  %900 = vmatprep.subr.bf16.mxu1 %v1005_v62 }
 0x23c   : > { %1031 = vrcp.f32 %v477_v20  ;;  %v457_v25 = vmul.f32 %v1030_v22, %v1022_v0  ;;  %v458_v26 = vmul.f32 %v1030_v22, %v1024_v1  ;;  %v467_v27 = vmax.f32 %v863_v23, 0.0  ;;  %v1007_v0 = vld [vmem:[%s1415_s2 + $0x50] sm:$0xff]  }
 0x23d   : > { %1033 = vrcp.f32 %v478_v21  ;;  %v468_v28 = vmax.f32 %v864_v24, 0.0  ;;  %v1008_v1 = vld [vmem:[%s1415_s2 + $0x10] sm:$0xff]  }
 0x23e   : > { %v865_v29 = vadd.f32 -0.0025, %v457_v25  ;;  %v866_v30 = vadd.f32 -0.0025, %v458_v26  ;;  %v479_v31 = vadd.f32 1e-12, %v467_v27  ;;  %v473_v44 = vmul.f32 %v467_v27, %v455_v18  ;;  %901 = vmatpush3.bf16.msra.mxu1 %v1006_v63 }
 0x23f   : > { %v480_v32 = vadd.f32 1e-12, %v468_v28  ;;  %v474_v46 = vmul.f32 %v468_v28, %v456_v19  ;;  %902 = vmatprep.subr.bf16.mxu1 %v1007_v0 }
 0x240   : > { %v469_v33 = vmax.f32 %v865_v29, 0.0  ;;  %v470_v34 = vmax.f32 %v866_v30, 0.0  ;;  %1035 = vrcp.f32 %v479_v31 }
 0x241   : > { %1037 = vrcp.f32 %v480_v32 }
 0x242   : > { %v481_v35 = vadd.f32 1e-12, %v469_v33  ;;  %v482_v36 = vadd.f32 1e-12, %v470_v34  ;;  %v475_v50 = vmul.f32 %v469_v33, %v457_v25  ;;  %v476_v52 = vmul.f32 %v470_v34, %v458_v26  ;;  %903 = vmatpush3.bf16.msra.mxu1 %v1008_v1 }
 0x243   : > { %904 = vmatprep.subr.bf16.mxu1 %v1009_v2 }
 0x244   : > { %1039 = vrcp.f32 %v481_v35 }
 0x245   : > { %1041 = vrcp.f32 %v482_v36 }
 0x246   : > { %905 = vmatpush3.bf16.msra.mxu1 %v1010_v3 }
 0x247   : > { %906 = vmatprep.subr.bf16.mxu1 %v1011_v4 }
 0x249   : > { %v1032_v38 = vpop.eup %1031 }
 0x24a   : > { %v1034_v40 = vpop.eup %1033  ;;  %v489_v41 = vmul.f32 %v1032_v38, %v471_v37  ;;  %907 = vmatpush3.bf16.msra.mxu1 %v1012_v5 }
 0x24b   : > { %v490_v42 = vmul.f32 %v1034_v40, %v472_v39 }
 0x24d   : > { %v495_v43 = vadd.f32 %v490_v42, %v489_v41  ;;  %v1036_v45 = vpop.eup %1035 }
 0x24e   : > { %v1038_v47 = vpop.eup %1037  ;;  %v491_v48 = vmul.f32 %v1036_v45, %v473_v44 }
 0x24f   : > { %496 = vadd.xlane.f32.xlu0 %v495_v43  ;;  %v492_v49 = vmul.f32 %v1038_v47, %v474_v46 }
 0x251   : > { %v1040_v51 = vpop.eup %1039  ;;  %v498_v54 = vadd.f32 %v492_v49, %v491_v48 }
 0x252   : > { %v1042_v53 = vpop.eup %1041  ;;  %v493_v55 = vmul.f32 %v1040_v51, %v475_v50 }
 0x253   : > { %v494_v56 = vmul.f32 %v1042_v53, %v476_v52  ;;  %499 = vadd.xlane.f32.xlu1 %v498_v54 }
 0x255   : > { %v501_v57 = vadd.f32 %v494_v56, %v493_v55 }
 0x257   : > { %502 = vadd.xlane.f32.xlu0 %v501_v57 }
 0x2d8   : > { %v497_v6 = vpop.xlane.xlu0 %496 }
 0x2d9   : > { %v504_v7 = vmax.f32 %v497_v6, 1e-12 }
 0x2db   : > { %1043 = vrcp.f32 %v504_v7 }
 0x2dc   : > { %v500_v8 = vpop.xlane.xlu1 %499 }
 0x2dd   : > { %v505_v9 = vmax.f32 %v500_v8, 1e-12 }
 0x2df   : > { %1045 = vrcp.f32 %v505_v9 }
 0x2e0   : > { %v503_v10 = vpop.xlane.xlu0 %502 }
 0x2e1   : > { %v506_v11 = vmax.f32 %v503_v10, 1e-12 }
 0x2e3   : > { %1047 = vrcp.f32 %v506_v11 }
 0x2e8   : > { %v1044_v12 = vpop.eup %1043 }
 0x2e9   : > { %v514_v13 = vmul.f32 %v1044_v12, %v490_v42  ;;  %v513_v14 = vmul.f32 %v1044_v12, %v489_v41 }
 0x2eb   : > { %520 = vst [vmem:[%s229_s14 + $0x8] sm:$0xff] %v514_v13  ;;  %519 = vst [vmem:[%s229_s14] sm:$0xff] %v513_v14 }
 0x2ec   : > { %v1046_v15 = vpop.eup %1045 }
 0x2ed   : > { %v516_v16 = vmul.f32 %v1046_v15, %v492_v49  ;;  %v515_v17 = vmul.f32 %v1046_v15, %v491_v48 }
 0x2ef   : > { %522 = vst [vmem:[%s229_s14 + $0x18] sm:$0xff] %v516_v16  ;;  %v526_v19 = vpack.c.bf16 %v516_v16, %v514_v13  ;;  %521 = vst [vmem:[%s229_s14 + $0x10] sm:$0xff] %v515_v17  ;;  %v525_v20 = vpack.c.bf16 %v515_v17, %v513_v14 }
 0x2f0   : > { %v1048_v18 = vpop.eup %1047 }
 0x2f1   : > { %v518_v21 = vmul.f32 %v1048_v18, %v494_v56  ;;  %v517_v22 = vmul.f32 %v1048_v18, %v493_v55  ;;  %689 = vmatprep.mubr.bf16.mxu1 %v526_v19 }
 0x2f2   : > { %690 = vmatmul.mubr.bf16.vlgmr.msra.gmra.mxu1 %v525_v20 }
 0x2f3   : > { %524 = vst [vmem:[%s229_s14 + $0x28] sm:$0xff] %v518_v21  ;;  %v528_v23 = vpack.c.bf16 %v518_v21, %v518_v21  ;;  %523 = vst [vmem:[%s229_s14 + $0x20] sm:$0xff] %v517_v22  ;;  %v527_v24 = vpack.c.bf16 %v517_v22, %v517_v22 }
 0x2f5   : > { %697 = vmatprep.mubr.bf16.mxu1 %v528_v23 }
 0x2fa   : > { %698 = vmatmul.mubr.bf16.gmra.mxu1 %v527_v24 }
 0x2fb   : > { %1062 = shalt.err (!%p1059_p3)
}
 0x2fc   : > { %s1063_s7 = scalar_lea.hbm %s1339_s25, 768  ;;  %s1067_s13 = scalar_lea.hbm %s1418_s5, 1536 }
 0x2fd   : > { %p1064_p4 = scmp.ne.s32.totalorder %s1339_s25, %s1063_s7  ;;  %p1068_p9 = scmp.lt.s32.totalorder %s1339_s25, %s1418_s5 }
 0x2fe   : > { %p1069_p10 = scmp.lt.s32.totalorder %s1067_s13, %s1063_s7 }
 0x2ff   : > { %p1065_p7 = pnand %p1064_p4, %p1216_p5 }
 0x300   : > { %p1070_p11 = por %p1069_p10, %p1068_p9 }
 0x301   : > { %p1066_p8 = pneg %p1065_p7 }
 0x303   : > { %p1071_p12 = pnand %p1070_p11, %p1066_p8 }
 0x305   : > { %1074 = shalt.err (!%p1071_p12)
}
 0x306   : > { %s1143_s17 = smov 256   ;;  %s1144_s23 = smov 16  }
 0x307   : > { %923 = dma.vmem_to_hbm [thread:$0]  (%p1216_p5), %s1334_s15, 768, %s1339_s25, %s714_s26, %s1143_s17, %s1143_s17, %s1144_s23  }
 0x308   : > { %s920_s30 = smul.u32 24, %s1330_s8  ;;  %s709_s7 = scalar_lea.sflag [#allocation3], %s1330_s8 }
 0x309   : > { %s888_s10 = smul.u32 384, %s1199_s22  ;;  %s1145_s11 = smov [#allocation2]  }
 0x30a   : > { %s222_s6 = scalar_lea.vmem [#allocation2], %s920_s30  ;;  %s1079_s12 = sshll.u32 %s1145_s11, 4  ;;  %s1080_s12 = int_to_ptr.vmem [resolvable:$false] %s1079_s12 }
 0x30b   : > { %s727_s9 = sshll.u32 %s222_s6, 4  ;;  %s1371_s26 = scalar_lea.hbm %s1417_s4, %s888_s10  ;;  %s1366_s9 = int_to_ptr.vmem [resolvable:$true] %s727_s9 }
 0x30c   : > { %s1075_s22 = scalar_lea.vmem %s1366_s9, 384  ;;  %s1081_s13 = scalar_lea.vmem %s1080_s12, 768 }
 0x30d   : > { %p1076_p13 = scmp.ne.s32.totalorder %s1366_s9, %s1075_s22  ;;  %p1082_p2 = scmp.lt.s32.totalorder %s1366_s9, %s1080_s12 }
 0x30e   : > { %p1083_p3 = scmp.lt.s32.totalorder %s1081_s13, %s1075_s22 }
 0x30f   : > { %p1077_p0 = pnand %p1076_p13, %p1216_p5 }
 0x310   : > { %p1084_p4 = por %p1083_p3, %p1082_p2 }
 0x311   : > { %p1078_p1 = pneg %p1077_p0 }
 0x313   : > { %p1085_p7 = pnand %p1084_p4, %p1078_p1 }
 0x3b2   : > { %v908_v25 = vpop.f32.mrf.mxu1 }
 0x3b4   : > { %v909_v26 = vpop.f32.mrf.mxu1 }
 0x3b5   : > { %v910_v27 = vadd.f32 %v909_v26, %v908_v25 }
 0x3b6   : > { %v911_v28 = vpop.f32.mrf.mxu1 }
 0x3b7   : > { %705 = vst [vmem:[%s222_s6] sm:$0xff] %v910_v27 }
 0x3b8   : > { %v912_v29 = vpop.f32.mrf.mxu1 }
 0x3b9   : > { %v913_v30 = vadd.f32 %v912_v29, %v911_v28 }
 0x3ba   : > { %v914_v31 = vpop.f32.mrf.mxu1 }
 0x3bb   : > { %706 = vst [vmem:[%s222_s6 + $0x8] sm:$0xff] %v913_v30 }
 0x3bc   : > { %v915_v32 = vpop.f32.mrf.mxu1 }
 0x3bd   : > { %v916_v33 = vadd.f32 %v915_v32, %v914_v31 }
 0x3be   : > { %v917_v34 = vpop.f32.mrf.mxu1 }
 0x3bf   : > { %707 = vst [vmem:[%s222_s6 + $0x10] sm:$0xff] %v916_v33 }
 0x3c0   : > { %v918_v35 = vpop.f32.mrf.mxu1 }
 0x3c1   : > { %1088 = shalt.err (!%p1085_p7)
}
 0x3c2   : > { %s1089_s14 = scalar_lea.hbm %s1371_s26, 384  ;;  %s1093_s23 = scalar_lea.hbm %s1417_s4, 768 }
 0x3c3   : > { %p1090_p8 = scmp.ne.s32.totalorder %s1371_s26, %s1089_s14  ;;  %p1094_p11 = scmp.lt.s32.totalorder %s1371_s26, %s1417_s4 }
 0x3c4   : > { %p1095_p12 = scmp.lt.s32.totalorder %s1093_s23, %s1089_s14 }
 0x3c5   : > { %p1091_p9 = pnand %p1090_p8, %p1216_p5 }
 0x3c6   : > { %p1096_p13 = por %p1095_p12, %p1094_p11 }
 0x3c7   : > { %p1092_p10 = pneg %p1091_p9 }
 0x3c9   : > { %p1097_p0 = pnand %p1096_p13, %p1092_p10 }
 0x3cb   : > { %1100 = shalt.err (!%p1097_p0)
}
 0x3cc   : > { %s1146_s10 = smov 128   ;;  %s1147_s15 = smov 8  }
 0x3cd   : > { %922 = dma.vmem_to_hbm [thread:$0]  (%p1216_p5), %s1366_s9, 384, %s1371_s26, %s709_s7, %s1146_s10, %s1146_s10, %s1147_s15  }
 0x3ce PF: > { %p933_p1 = scmp.ge.s32.totalorder %s1139_s21, 2  ;;  %s759_s25 = sand.u32 1, %s1127_s18  }
 0x3cf   : > { %s760_s22 = scalar_lea.sflag [#allocation3], %s759_s25 }
 0x3d0   : > { %p927_p2 = pnand %p933_p1, %p1220_p6 }
 0x3d2   : > { %p928_p3 = pneg %p927_p2 }
 0x3d4   : > { %1118 = dma.done.wait (%p928_p3), %s760_s22, 384  }
 0x3d5   : > { %1120 = vsyncadd (%p928_p3), %s760_s22, 4294966912  ;;  %s769_s11 = scalar_lea.sflag [#allocation5], %s759_s25 }
 0x3d6   : > { %1122 = dma.done.wait (%p928_p3), %s769_s11, 768  }
 0x3d7   : > { %1124 = vsyncadd (%p928_p3), %s769_s11, 4294966528  ;;  %p19_p5 = scmp.ge.s32.totalorder %s1203_s24, 4   ;;  %s1421_s18 = smov %s1131_s19 }
 0x3d8   : > { %s1422_s19 = smov %s1135_s20  ;;  %s1423_s20 = smov %s1214_s27 }
 0x3d9   : > { %s1424_s21 = smov %s1203_s24  ;;  %21 = sbr.rel (!%p19_p5) target bundleno = 5 (0x5), region = 88 }
 0x3de   :  { %774 = vsyncpa [#allocation3], 1 }
 0x3df   :  { %776 = vsyncpa [#allocation3 + $0x1], 1 }
 0x3e0   :  { %777 = vsyncpa [#allocation5], 1 }
 0x3e1   :  { %779 = vsyncpa [#allocation5 + $0x1], 1 }

</bundles_post_ra>
